<compile_context>
chip_gen: v5e
topology: v5e:2x2
jax: 0.10.0
libtpu: 0.0.40
codegen_flags: <defaults>
</compile_context>

<pallas_src>
import functools

import jax
import jax.numpy as jnp
import numpy as np
from jax.experimental import pallas as pl
from jax.experimental.pallas import tpu as pltpu


def _reorg_kernel(x_ref, o_ref, *, stride):
    """One grid step handles one (batch-tile, channel-tile) pair.

    x_ref : (Tb, R, s*W)        R = Tc*Hh rows; row m = c*Hh + i holds
                                x[b, c, i*s : i*s + s, :] phase-major
    o_ref : (Tb, s, s, R, Ww)   output slab, phase-major
    """
    s = stride
    Tb, R, sW = x_ref.shape
    Ww = o_ref.shape[-1]
    W = sW // s

    # One-hot column-select matrices, built once per invocation from 2-D iota
    # (no extra operand, no per-step DMA, no double-buffered gw in VMEM).
    #   sel[q][w, j] = 1  iff  w == j*s + q
    row = jax.lax.broadcasted_iota(jnp.int32, (W, Ww), 0)
    col = jax.lax.broadcasted_iota(jnp.int32, (W, Ww), 1)
    sels = [(row == col * s + q).astype(x_ref.dtype) for q in range(s)]

    for t in range(Tb):
        for p in range(s):
            # H-phase p: contiguous (non-strided) lane window of the input ref.
            xp = x_ref[t, :, pl.ds(p * W, W)]                      # (R, W)
            for q in range(s):
                # W-phase q: exact one-hot select on the MXU, stored straight
                # into the phase-major output slab -- no reshapes anywhere.
                y = jnp.dot(xp, sels[q], preferred_element_type=jnp.float32)
                o_ref[t, p, q] = y.astype(o_ref.dtype)


def _round_up(n, m):
    return -(-n // m) * m


def _vmem_capacity_bytes():
    try:
        cap = getattr(pltpu.get_tpu_info(), "vmem_capacity_bytes", None)
        if cap:
            return int(cap)
    except Exception:
        pass
    return 64 * 1024 * 1024  # conservative default (v7x: 64 MiB per core)


def _padded_tile_bytes(tb, tc, hh, w, ww, s, itemsize):
    """Padded (sublane x lane) VMEM footprint of one input + one output block."""
    subl = max(8, 32 // itemsize)           # 8 (f32) / 16 (bf16) / 32 (i8)
    rows = _round_up(tc * hh, subl)
    in_b = tb * rows * _round_up(s * w, 128) * itemsize
    out_b = tb * s * s * rows * _round_up(ww, 128) * itemsize
    return in_b, out_b


def reorg(x, stride=2, *, channel_tile=None, batch_tile=None):
    """Pallas TPU implementation of the YOLO Reorg (space-to-depth) layer."""
    assert x.ndim == 4
    if not jnp.issubdtype(x.dtype, jnp.floating):
        raise TypeError(
            f"reorg Pallas kernel requires a floating dtype (got {x.dtype}); "
            "the exact one-hot MXU path is float-only and v7x has no int MXU.")
    B, C, H, W = x.shape
    s = int(stride)
    assert H % s == 0 and W % s == 0
    Hh, Ww = H // s, W // s
    itemsize = jnp.dtype(x.dtype).itemsize
    subl = max(8, 32 // itemsize)

    # ---- tile selection against PADDED footprints + real VMEM capacity ------
    cap = _vmem_capacity_bytes()
    tile_budget = min(cap // 8, 16 * 1024 * 1024)   # ~8 MiB on v7x, 16 MiB on v5e/v6e

    def tc_valid(d):
        # keep the second-to-last block dim sublane-aligned or full
        return d == C or (d * Hh) % subl == 0

    if channel_tile is None:
        cands = [d for d in range(1, C + 1) if C % d == 0 and tc_valid(d)]
        fitting = [d for d in cands
                   if sum(_padded_tile_bytes(1, d, Hh, W, Ww, s, itemsize)) <= tile_budget]
        channel_tile = max(fitting) if fitting else min(cands)
    Tc = int(channel_tile)
    assert C % Tc == 0 and tc_valid(Tc), (Tc, C, Hh)

    if batch_tile is None:
        batch_tile = 1
        if Tc == C:
            # Whole images are small (YOLO: ~173 KiB each): group batches so
            # per-step DMAs amortize the ~0.35 us step overhead and both v7x
            # TensorCores get >= 2 grid steps of work.
            for d in range(B, 0, -1):
                if B % d == 0 and sum(
                        _padded_tile_bytes(d, Tc, Hh, W, Ww, s, itemsize)) <= tile_budget:
                    batch_tile = d
                    break
    Tb = int(batch_tile)
    assert B % Tb == 0

    in_b, out_b = _padded_tile_bytes(Tb, Tc, Hh, W, Ww, s, itemsize)
    # double-buffered in/out blocks + f32 matmul temporaries + slack, capped
    # below the physical capacity of the current generation.
    vmem_limit = int(min(0.75 * cap, max(32 * 1024 * 1024, 3 * (in_b + out_b))))

    # ---- metadata-only views so the kernel never reshapes --------------------
    xf = x.reshape(B, C * Hh, s * W)

    kernel = functools.partial(_reorg_kernel, stride=s)
    out5 = pl.pallas_call(
        kernel,
        out_shape=jax.ShapeDtypeStruct((B, s, s, C * Hh, Ww), x.dtype),
        grid=(B // Tb, C // Tc),
        in_specs=[pl.BlockSpec((Tb, Tc * Hh, s * W), lambda bt, ct: (bt, ct, 0))],
        out_specs=pl.BlockSpec((Tb, s, s, Tc * Hh, Ww),
                               lambda bt, ct: (bt, 0, 0, ct, 0)),
        compiler_params=pltpu.CompilerParams(
            dimension_semantics=("parallel", "parallel"),
            vmem_limit_bytes=vmem_limit,
        ),
    )(xf)

    # Free (metadata-only) reshape back to the PyTorch output layout.
    return out5.reshape(B, s * s * C, Hh, Ww)


def reorg_reference(x, stride=2):
    """Pure-JAX reference reproducing the PyTorch view/transpose sequence."""
    B, C, H, W = x.shape
    s = stride
    y = x.reshape(B, C, H // s, s, W // s, s)
    y = jnp.transpose(y, (0, 3, 5, 1, 2, 4))  # (B, s, s, C, H//s, W//s)
    return y.reshape(B, s * s * C, H // s, W // s)


if __name__ == "__main__":
    key = jax.random.PRNGKey(0)

    # Main check (module-default stride=2).
    B, C, H, W = 2, 4, 16, 16
    stride = 2
    x = jax.random.normal(key, (B, C, H, W), dtype=jnp.float32)
    out = jax.block_until_ready(reorg(x, stride=stride))
    ref = jax.block_until_ready(reorg_reference(x, stride=stride))
    assert out.shape == (B, stride * stride * C, H // stride, W // stride), out.shape
    np.testing.assert_allclose(np.asarray(out), np.asarray(ref), rtol=0, atol=0)

    # Exercise the channel-tiled grid axis (C // Tc > 1, Tc*Hh sublane-aligned).
    x2 = jax.random.normal(jax.random.PRNGKey(1), (1, 6, 16, 16), dtype=jnp.float32)
    out2 = jax.block_until_ready(reorg(x2, stride=2, channel_tile=3))
    ref2 = jax.block_until_ready(reorg_reference(x2, stride=2))
    np.testing.assert_allclose(np.asarray(out2), np.asarray(ref2), rtol=0, atol=0)

    # Exercise the batch-tiled path (Tb > 1).
    x3 = jax.random.normal(jax.random.PRNGKey(2), (4, 4, 16, 16), dtype=jnp.float32)
    out3 = jax.block_until_ready(reorg(x3, stride=2, batch_tile=2))
    ref3 = jax.block_until_ready(reorg_reference(x3, stride=2))
    np.testing.assert_allclose(np.asarray(out3), np.asarray(ref3), rtol=0, atol=0)

    print("KERNEL_OK")
</pallas_src>

<mosaic_0001>
module attributes {stable_mosaic.version = 11 : i64} {
  func.func @_reorg_kernel(%arg0: i32, %arg1: i32, %arg2: memref<2x32x32xf32, #tpu.memory_space<vmem>>, %arg3: memref<2x2x2x32x8xf32, #tpu.memory_space<vmem>>) attributes {dimension_semantics = [#tpu.dimension_semantics<parallel>, #tpu.dimension_semantics<parallel>], iteration_bounds = array<i64: 1, 1>, scalar_prefetch = 0 : i64, scratch_operands = 0 : i64, tpu.core_type = #tpu.core_type<tc>, window_params = [{transform_indices = @transform_0, window_bounds = array<i64: 2, 32, 32>}, {transform_indices = @transform_1, window_bounds = array<i64: 2, 2, 2, 32, 8>}]} {
    %0 = tpu.iota {dimensions = array<i32: 0>} : vector<16x8xi32>
    %1 = tpu.iota {dimensions = array<i32: 1>} : vector<16x8xi32>
    %c2_i32 = arith.constant 2 : i32
    %2 = vector.broadcast %c2_i32 : i32 to vector<16x8xi32>
    %3 = arith.muli %1, %2 : vector<16x8xi32>
    %c0_i32 = arith.constant 0 : i32
    %4 = vector.broadcast %c0_i32 : i32 to vector<16x8xi32>
    %5 = arith.addi %3, %4 : vector<16x8xi32>
    %6 = arith.cmpi eq, %0, %5 : vector<16x8xi32>
    %7 = arith.extui %6 : vector<16x8xi1> to vector<16x8xi32>
    %8 = arith.sitofp %7 : vector<16x8xi32> to vector<16x8xf32>
    %c2_i32_0 = arith.constant 2 : i32
    %9 = vector.broadcast %c2_i32_0 : i32 to vector<16x8xi32>
    %10 = arith.muli %1, %9 : vector<16x8xi32>
    %c1_i32 = arith.constant 1 : i32
    %11 = vector.broadcast %c1_i32 : i32 to vector<16x8xi32>
    %12 = arith.addi %10, %11 : vector<16x8xi32>
    %13 = arith.cmpi eq, %0, %12 : vector<16x8xi32>
    %14 = arith.extui %13 : vector<16x8xi1> to vector<16x8xi32>
    %15 = arith.sitofp %14 : vector<16x8xi32> to vector<16x8xf32>
    %c0 = arith.constant 0 : index
    %c0_1 = arith.constant 0 : index
    %c0_2 = arith.constant 0 : index
    %16 = vector.load %arg2[%c0, %c0_1, %c0_2] : memref<2x32x32xf32, #tpu.memory_space<vmem>>, vector<1x32x16xf32>
    %17 = vector.shape_cast %16 : vector<1x32x16xf32> to vector<32x16xf32>
    %cst = arith.constant dense<0.000000e+00> : vector<32x8xf32>
    %18 = tpu.matmul %17, %8, %cst {dimension_numbers = #tpu.dot_dimension_numbers<[1], [0], [0], [1], [0, 0, 1, 1], [], []>} : vector<32x16xf32>, vector<16x8xf32>, vector<32x8xf32> -> vector<32x8xf32>
    %c0_3 = arith.constant 0 : index
    %c0_4 = arith.constant 0 : index
    %c0_5 = arith.constant 0 : index
    %c0_6 = arith.constant 0 : index
    %c0_7 = arith.constant 0 : index
    %19 = vector.load %arg3[%c0_3, %c0_4, %c0_5, %c0_6, %c0_7] : memref<2x2x2x32x8xf32, #tpu.memory_space<vmem>>, vector<1x1x1x32x8xf32>
    %20 = vector.shape_cast %19 : vector<1x1x1x32x8xf32> to vector<32x8xf32>
    %21 = vector.shape_cast %18 : vector<32x8xf32> to vector<1x1x1x32x8xf32>
    tpu.vector_store %arg3[%c0_3, %c0_4, %c0_5, %c0_6, %c0_7], %21 {strides = array<i32>} : memref<2x2x2x32x8xf32, #tpu.memory_space<vmem>>, vector<1x1x1x32x8xf32>,
    %cst_8 = arith.constant dense<0.000000e+00> : vector<32x8xf32>
    %22 = tpu.matmul %17, %15, %cst_8 {dimension_numbers = #tpu.dot_dimension_numbers<[1], [0], [0], [1], [0, 0, 1, 1], [], []>} : vector<32x16xf32>, vector<16x8xf32>, vector<32x8xf32> -> vector<32x8xf32>
    %c0_9 = arith.constant 0 : index
    %c0_10 = arith.constant 0 : index
    %c1 = arith.constant 1 : index
    %c0_11 = arith.constant 0 : index
    %c0_12 = arith.constant 0 : index
    %23 = vector.load %arg3[%c0_9, %c0_10, %c1, %c0_11, %c0_12] : memref<2x2x2x32x8xf32, #tpu.memory_space<vmem>>, vector<1x1x1x32x8xf32>
    %24 = vector.shape_cast %23 : vector<1x1x1x32x8xf32> to vector<32x8xf32>
    %25 = vector.shape_cast %22 : vector<32x8xf32> to vector<1x1x1x32x8xf32>
    tpu.vector_store %arg3[%c0_9, %c0_10, %c1, %c0_11, %c0_12], %25 {strides = array<i32>} : memref<2x2x2x32x8xf32, #tpu.memory_space<vmem>>, vector<1x1x1x32x8xf32>,
    %c0_13 = arith.constant 0 : index
    %c0_14 = arith.constant 0 : index
    %c16 = arith.constant 16 : index
    %26 = vector.load %arg2[%c0_13, %c0_14, %c16] : memref<2x32x32xf32, #tpu.memory_space<vmem>>, vector<1x32x16xf32>
    %27 = vector.shape_cast %26 : vector<1x32x16xf32> to vector<32x16xf32>
    %cst_15 = arith.constant dense<0.000000e+00> : vector<32x8xf32>
    %28 = tpu.matmul %27, %8, %cst_15 {dimension_numbers = #tpu.dot_dimension_numbers<[1], [0], [0], [1], [0, 0, 1, 1], [], []>} : vector<32x16xf32>, vector<16x8xf32>, vector<32x8xf32> -> vector<32x8xf32>
    %c0_16 = arith.constant 0 : index
    %c1_17 = arith.constant 1 : index
    %c0_18 = arith.constant 0 : index
    %c0_19 = arith.constant 0 : index
    %c0_20 = arith.constant 0 : index
    %29 = vector.load %arg3[%c0_16, %c1_17, %c0_18, %c0_19, %c0_20] : memref<2x2x2x32x8xf32, #tpu.memory_space<vmem>>, vector<1x1x1x32x8xf32>
    %30 = vector.shape_cast %29 : vector<1x1x1x32x8xf32> to vector<32x8xf32>
    %31 = vector.shape_cast %28 : vector<32x8xf32> to vector<1x1x1x32x8xf32>
    tpu.vector_store %arg3[%c0_16, %c1_17, %c0_18, %c0_19, %c0_20], %31 {strides = array<i32>} : memref<2x2x2x32x8xf32, #tpu.memory_space<vmem>>, vector<1x1x1x32x8xf32>,
    %cst_21 = arith.constant dense<0.000000e+00> : vector<32x8xf32>
    %32 = tpu.matmul %27, %15, %cst_21 {dimension_numbers = #tpu.dot_dimension_numbers<[1], [0], [0], [1], [0, 0, 1, 1], [], []>} : vector<32x16xf32>, vector<16x8xf32>, vector<32x8xf32> -> vector<32x8xf32>
    %c0_22 = arith.constant 0 : index
    %c1_23 = arith.constant 1 : index
    %c1_24 = arith.constant 1 : index
    %c0_25 = arith.constant 0 : index
    %c0_26 = arith.constant 0 : index
    %33 = vector.load %arg3[%c0_22, %c1_23, %c1_24, %c0_25, %c0_26] : memref<2x2x2x32x8xf32, #tpu.memory_space<vmem>>, vector<1x1x1x32x8xf32>
    %34 = vector.shape_cast %33 : vector<1x1x1x32x8xf32> to vector<32x8xf32>
    %35 = vector.shape_cast %32 : vector<32x8xf32> to vector<1x1x1x32x8xf32>
    tpu.vector_store %arg3[%c0_22, %c1_23, %c1_24, %c0_25, %c0_26], %35 {strides = array<i32>} : memref<2x2x2x32x8xf32, #tpu.memory_space<vmem>>, vector<1x1x1x32x8xf32>,
    %c1_27 = arith.constant 1 : index
    %c0_28 = arith.constant 0 : index
    %c0_29 = arith.constant 0 : index
    %36 = vector.load %arg2[%c1_27, %c0_28, %c0_29] : memref<2x32x32xf32, #tpu.memory_space<vmem>>, vector<1x32x16xf32>
    %37 = vector.shape_cast %36 : vector<1x32x16xf32> to vector<32x16xf32>
    %cst_30 = arith.constant dense<0.000000e+00> : vector<32x8xf32>
    %38 = tpu.matmul %37, %8, %cst_30 {dimension_numbers = #tpu.dot_dimension_numbers<[1], [0], [0], [1], [0, 0, 1, 1], [], []>} : vector<32x16xf32>, vector<16x8xf32>, vector<32x8xf32> -> vector<32x8xf32>
    %c1_31 = arith.constant 1 : index
    %c0_32 = arith.constant 0 : index
    %c0_33 = arith.constant 0 : index
    %c0_34 = arith.constant 0 : index
    %c0_35 = arith.constant 0 : index
    %39 = vector.load %arg3[%c1_31, %c0_32, %c0_33, %c0_34, %c0_35] : memref<2x2x2x32x8xf32, #tpu.memory_space<vmem>>, vector<1x1x1x32x8xf32>
    %40 = vector.shape_cast %39 : vector<1x1x1x32x8xf32> to vector<32x8xf32>
    %41 = vector.shape_cast %38 : vector<32x8xf32> to vector<1x1x1x32x8xf32>
    tpu.vector_store %arg3[%c1_31, %c0_32, %c0_33, %c0_34, %c0_35], %41 {strides = array<i32>} : memref<2x2x2x32x8xf32, #tpu.memory_space<vmem>>, vector<1x1x1x32x8xf32>,
    %cst_36 = arith.constant dense<0.000000e+00> : vector<32x8xf32>
    %42 = tpu.matmul %37, %15, %cst_36 {dimension_numbers = #tpu.dot_dimension_numbers<[1], [0], [0], [1], [0, 0, 1, 1], [], []>} : vector<32x16xf32>, vector<16x8xf32>, vector<32x8xf32> -> vector<32x8xf32>
    %c1_37 = arith.constant 1 : index
    %c0_38 = arith.constant 0 : index
    %c1_39 = arith.constant 1 : index
    %c0_40 = arith.constant 0 : index
    %c0_41 = arith.constant 0 : index
    %43 = vector.load %arg3[%c1_37, %c0_38, %c1_39, %c0_40, %c0_41] : memref<2x2x2x32x8xf32, #tpu.memory_space<vmem>>, vector<1x1x1x32x8xf32>
    %44 = vector.shape_cast %43 : vector<1x1x1x32x8xf32> to vector<32x8xf32>
    %45 = vector.shape_cast %42 : vector<32x8xf32> to vector<1x1x1x32x8xf32>
    tpu.vector_store %arg3[%c1_37, %c0_38, %c1_39, %c0_40, %c0_41], %45 {strides = array<i32>} : memref<2x2x2x32x8xf32, #tpu.memory_space<vmem>>, vector<1x1x1x32x8xf32>,
    %c1_42 = arith.constant 1 : index
    %c0_43 = arith.constant 0 : index
    %c16_44 = arith.constant 16 : index
    %46 = vector.load %arg2[%c1_42, %c0_43, %c16_44] : memref<2x32x32xf32, #tpu.memory_space<vmem>>, vector<1x32x16xf32>
    %47 = vector.shape_cast %46 : vector<1x32x16xf32> to vector<32x16xf32>
    %cst_45 = arith.constant dense<0.000000e+00> : vector<32x8xf32>
    %48 = tpu.matmul %47, %8, %cst_45 {dimension_numbers = #tpu.dot_dimension_numbers<[1], [0], [0], [1], [0, 0, 1, 1], [], []>} : vector<32x16xf32>, vector<16x8xf32>, vector<32x8xf32> -> vector<32x8xf32>
    %c1_46 = arith.constant 1 : index
    %c1_47 = arith.constant 1 : index
    %c0_48 = arith.constant 0 : index
    %c0_49 = arith.constant 0 : index
    %c0_50 = arith.constant 0 : index
    %49 = vector.load %arg3[%c1_46, %c1_47, %c0_48, %c0_49, %c0_50] : memref<2x2x2x32x8xf32, #tpu.memory_space<vmem>>, vector<1x1x1x32x8xf32>
    %50 = vector.shape_cast %49 : vector<1x1x1x32x8xf32> to vector<32x8xf32>
    %51 = vector.shape_cast %48 : vector<32x8xf32> to vector<1x1x1x32x8xf32>
    tpu.vector_store %arg3[%c1_46, %c1_47, %c0_48, %c0_49, %c0_50], %51 {strides = array<i32>} : memref<2x2x2x32x8xf32, #tpu.memory_space<vmem>>, vector<1x1x1x32x8xf32>,
    %cst_51 = arith.constant dense<0.000000e+00> : vector<32x8xf32>
    %52 = tpu.matmul %47, %15, %cst_51 {dimension_numbers = #tpu.dot_dimension_numbers<[1], [0], [0], [1], [0, 0, 1, 1], [], []>} : vector<32x16xf32>, vector<16x8xf32>, vector<32x8xf32> -> vector<32x8xf32>
    %c1_52 = arith.constant 1 : index
    %c1_53 = arith.constant 1 : index
    %c1_54 = arith.constant 1 : index
    %c0_55 = arith.constant 0 : index
    %c0_56 = arith.constant 0 : index
    %53 = vector.load %arg3[%c1_52, %c1_53, %c1_54, %c0_55, %c0_56] : memref<2x2x2x32x8xf32, #tpu.memory_space<vmem>>, vector<1x1x1x32x8xf32>
    %54 = vector.shape_cast %53 : vector<1x1x1x32x8xf32> to vector<32x8xf32>
    %55 = vector.shape_cast %52 : vector<32x8xf32> to vector<1x1x1x32x8xf32>
    tpu.vector_store %arg3[%c1_52, %c1_53, %c1_54, %c0_55, %c0_56], %55 {strides = array<i32>} : memref<2x2x2x32x8xf32, #tpu.memory_space<vmem>>, vector<1x1x1x32x8xf32>,
    return
  }
  func.func @transform_0(%arg0: i32, %arg1: i32) -> (i32, i32, i32) {
    %c0_i32 = arith.constant 0 : i32
    %c0_i32_0 = arith.constant 0 : i32
    return %arg0, %arg1, %c0_i32 : i32, i32, i32
  }
  func.func @transform_1(%arg0: i32, %arg1: i32) -> (i32, i32, i32, i32, i32) {
    %c0_i32 = arith.constant 0 : i32
    %c0_i32_0 = arith.constant 0 : i32
    %c0_i32_1 = arith.constant 0 : i32
    %c0_i32_2 = arith.constant 0 : i32
    return %arg0, %c0_i32, %c0_i32_0, %arg1, %c0_i32_1 : i32, i32, i32, i32, i32
  }
}

</mosaic_0001>

<bundles_post_ra>
// kernel: tpu_custom_call.1
= control target key start
LH: loop header
LB: loop body
LE: loop exit
PB: predicated region body
PF: predicated region fallthrough
CT: control target
= control target key end

     0   :  { %6 = vsyncpa [#allocation3], 0  ;;  %s513_s9 = smov [#allocation2]   ;;  %s514_s11 = smov 128   ;;  %s703_s0 = inlined_call_operand.hbm [shape: f32[2,32,32], index: 0, kind: input, shape index: {}]   ;;  %s704_s1 = inlined_call_operand.vmem [shape: f32[2,2,2,32,8], index: 1, kind: output, shape index: {}]  }
   0x1   :  { %s11_s8 = sshll.u32 %s703_s0, 4  ;;  %s13_s10 = sshll.u32 %s513_s9, 4  ;;  %s12_s8 = int_to_ptr.hbm [resolvable:$true] %s11_s8  ;;  %s14_s10 = int_to_ptr.vmem [resolvable:$true] %s13_s10 }
   0x2   :  { %s515_s12 = smov 8  }
   0x3   :  { %19 = dma.hbm_to_vmem [thread:$0]  %s12_s8, 1024, %s14_s10, [#allocation3], %s514_s11, %s514_s11, %s515_s12  }
   0x4   :  { %511 = dma.done.wait [#allocation3], 1024  }
   0x5   :  { %512 = vsyncadd [#allocation3], 4294966272  ;;  %v24_v0 = vlaneseq  ;;  %v128_v6 = vld [vmem:[#allocation2] sm:$0xff]  ;;  %v130_v7 = vld [vmem:[#allocation2 + $0x10] sm:$0xff]  ;;  %v516_v8 = vmov 1.0   ;;  %s517_s0 = smov 112  }
   0x6   :  { %136 = vrot.lane.b32.xlu0 %v128_v6, %s517_s0  ;;  %140 = vrot.lane.b32.xlu1 %v130_v7, %s517_s0  ;;  %v305_v9 = vld [vmem:[#allocation2 + $0x20] sm:$0xff]  ;;  %v129_v10 = vld [vmem:[#allocation2 + $0x8] sm:$0xff]  ;;  %v131_v11 = vld [vmem:[#allocation2 + $0x18] sm:$0xff]  ;;  %vm47_vm4 = vcmask 130048   ;;  %vm89_vm5 = vcmask 64512  }
   0x7   :  { %v25_v1 = vshrl.u32 %v24_v0, 7  ;;  %v28_v2 = vand.u32 127, %v24_v0  ;;  %313 = vrot.lane.b32.xlu2 %v305_v9, %s517_s0  ;;  %v306_v12 = vld [vmem:[#allocation2 + $0x28] sm:$0xff]  ;;  %v307_v13 = vld [vmem:[#allocation2 + $0x30] sm:$0xff]  ;;  %v308_v14 = vld [vmem:[#allocation2 + $0x38] sm:$0xff] }
   0x9   :  { %v26_v3 = vadd.s32 8, %v25_v1  ;;  %v29_v4 = vmul.u32 2, %v28_v2 }
   0xb   :  { %vm31_vm0 = vcmp.eq.s32.totalorder %v26_v3, %v29_v4  ;;  %v36_v5 = vadd.s32 1, %v29_v4  ;;  %vm30_vm1 = vcmp.eq.s32.totalorder %v25_v1, %v29_v4 }
   0xc   :  { %422 = vmatpush.msk.msra.mxu2 %vm31_vm0, %v516_v8  ;;  %406 = vmatpush.msk.msra.mxu0 %vm31_vm0, %v516_v8 }
   0xd   :  { %vm38_vm2 = vcmp.eq.s32.totalorder %v26_v3, %v36_v5  ;;  %vm37_vm3 = vcmp.eq.s32.totalorder %v25_v1, %v36_v5 }
   0xe   :  { %432 = vmatpush.msk.msra.mxu3 %vm38_vm2, %v516_v8  ;;  %423 = vmatpush.msk.msra.mxu2 %vm30_vm1, %v516_v8 }
   0xf   :  { %412 = vmatpush.msk.msra.mxu1 %vm38_vm2, %v516_v8  ;;  %407 = vmatpush.msk.msra.mxu0 %vm30_vm1, %v516_v8 }
  0x10   :  { %433 = vmatpush.msk.msra.mxu3 %vm37_vm3, %v516_v8  ;;  %462 = vmatpush.msk.msrb.mxu2 %vm31_vm0, %v516_v8 }
  0x11   :  { %413 = vmatpush.msk.msra.mxu1 %vm37_vm3, %v516_v8  ;;  %442 = vmatpush.msk.msrb.mxu0 %vm31_vm0, %v516_v8 }
  0x12   :  { %472 = vmatpush.msk.msrb.mxu3 %vm38_vm2, %v516_v8  ;;  %463 = vmatpush.msk.msrb.mxu2 %vm30_vm1, %v516_v8 }
  0x13   :  { %452 = vmatpush.msk.msrb.mxu1 %vm38_vm2, %v516_v8  ;;  %443 = vmatpush.msk.msrb.mxu0 %vm30_vm1, %v516_v8 }
  0x14   :  { %473 = vmatpush.msk.msrb.mxu3 %vm37_vm3, %v516_v8  ;;  %138 = vrot.lane.b32.xlu0 %v129_v10, %s517_s0 }
  0x15   :  { %142 = vrot.lane.b32.xlu1 %v131_v11, %s517_s0  ;;  %315 = vrot.lane.b32.xlu2 %v306_v12, %s517_s0 }
  0x16   :  { %453 = vmatpush.msk.msrb.mxu1 %vm37_vm3, %v516_v8  ;;  %408 = vmatmul.msk.f32.vlgmr.msra.gmra.mxu0 %vm47_vm4, %v128_v6 }
  0x17   :  { %414 = vmatmul.msk.f32.vlgmr.msra.gmra.mxu1 %vm47_vm4, %v128_v6 }
  0x1c   :  { %317 = vrot.lane.b32.xlu0 %v307_v13, %s517_s0 }
  0x1d   :  { %319 = vrot.lane.b32.xlu1 %v308_v14, %s517_s0 }
  0x1e   :  { %409 = vmatmul.msk.f32.gmra.mxu0 %vm47_vm4, %v129_v10 }
  0x1f   :  { %415 = vmatmul.msk.f32.gmra.mxu1 %vm47_vm4, %v129_v10 }
  0x26   :  { %410 = vmatmul.msk.f32.gmra.mxu0 %vm47_vm4, %v130_v7 }
  0x27   :  { %416 = vmatmul.msk.f32.gmra.mxu1 %vm47_vm4, %v130_v7 }
  0x2e   :  { %411 = vmatmul.msk.f32.gmra.mxu0 %vm47_vm4, %v131_v11 }
  0x2f   :  { %417 = vmatmul.msk.f32.gmra.mxu1 %vm47_vm4, %v131_v11 }
  0x36   :  { %444 = vmatmul.msk.f32.vlgmr.msrb.gmra.mxu0 %vm47_vm4, %v305_v9 }
  0x37   :  { %454 = vmatmul.msk.f32.vlgmr.msrb.gmra.mxu1 %vm47_vm4, %v305_v9 }
  0x3e   :  { %445 = vmatmul.msk.f32.gmra.mxu0 %vm47_vm4, %v306_v12 }
  0x3f   :  { %455 = vmatmul.msk.f32.gmra.mxu1 %vm47_vm4, %v306_v12 }
  0x46   :  { %446 = vmatmul.msk.f32.gmra.mxu0 %vm47_vm4, %v307_v13 }
  0x47   :  { %456 = vmatmul.msk.f32.gmra.mxu1 %vm47_vm4, %v307_v13 }
  0x4e   :  { %447 = vmatmul.msk.f32.gmra.mxu0 %vm47_vm4, %v308_v14 }
  0x4f   :  { %457 = vmatmul.msk.f32.gmra.mxu1 %vm47_vm4, %v308_v14 }
  0x61   :  { %v314_v19 = vpop.permute.xlu2 %313 }
  0x6f   :  { %v316_v20 = vpop.permute.xlu2 %315 }
  0x78   :  { %v137_v15 = vpop.permute.xlu0 %136  ;;  %v141_v17 = vpop.permute.xlu1 %140 }
  0x79   :  { %424 = vmatmul.msk.f32.vlgmr.msra.gmra.mxu2 %vm47_vm4, %v137_v15  ;;  %434 = vmatmul.msk.f32.vlgmr.msra.gmra.mxu3 %vm47_vm4, %v137_v15 }
  0x86   :  { %v139_v16 = vpop.permute.xlu0 %138 }
  0x87   :  { %425 = vmatmul.msk.f32.gmra.mxu2 %vm47_vm4, %v139_v16  ;;  %435 = vmatmul.msk.f32.gmra.mxu3 %vm47_vm4, %v139_v16  ;;  %v143_v18 = vpop.permute.xlu1 %142 }
  0x8e   :  { %v318_v21 = vpop.permute.xlu0 %317 }
  0x8f   :  { %426 = vmatmul.msk.f32.gmra.mxu2 %vm47_vm4, %v141_v17  ;;  %436 = vmatmul.msk.f32.gmra.mxu3 %vm47_vm4, %v141_v17  ;;  %v320_v22 = vpop.permute.xlu1 %319 }
  0x93   :  { %v77_v23 = vpop.f32.mrf.mxu0 }
  0x94   :  { %v111_v24 = vpop.f32.mrf.mxu1  ;;  %90 = vst.msk [vmem:[%s704_s1] sm:$0xff] %vm89_vm5, %v77_v23 }
  0x95   :  { %418 = vst.msk [vmem:[%s704_s1 + $0x20] sm:$0xff] %vm89_vm5, %v111_v24 }
  0x97   :  { %427 = vmatmul.msk.f32.gmra.mxu2 %vm47_vm4, %v143_v18  ;;  %437 = vmatmul.msk.f32.gmra.mxu3 %vm47_vm4, %v143_v18 }
  0x9b   :  { %v80_v25 = vpop.f32.mrf.mxu0 }
  0x9c   :  { %v114_v26 = vpop.f32.mrf.mxu1  ;;  %91 = vst.msk [vmem:[%s704_s1 + $0x8] sm:$0xff] %vm89_vm5, %v80_v25 }
  0x9d   :  { %419 = vst.msk [vmem:[%s704_s1 + $0x28] sm:$0xff] %vm89_vm5, %v114_v26 }
  0x9f   :  { %464 = vmatmul.msk.f32.vlgmr.msrb.gmra.mxu2 %vm47_vm4, %v314_v19  ;;  %474 = vmatmul.msk.f32.vlgmr.msrb.gmra.mxu3 %vm47_vm4, %v314_v19 }
  0xa3   :  { %v83_v27 = vpop.f32.mrf.mxu0 }
  0xa4   :  { %v117_v28 = vpop.f32.mrf.mxu1  ;;  %92 = vst.msk [vmem:[%s704_s1 + $0x10] sm:$0xff] %vm89_vm5, %v83_v27 }
  0xa5   :  { %420 = vst.msk [vmem:[%s704_s1 + $0x30] sm:$0xff] %vm89_vm5, %v117_v28 }
  0xa7   :  { %465 = vmatmul.msk.f32.gmra.mxu2 %vm47_vm4, %v316_v20  ;;  %475 = vmatmul.msk.f32.gmra.mxu3 %vm47_vm4, %v316_v20 }
  0xab   :  { %v86_v29 = vpop.f32.mrf.mxu0 }
  0xac   :  { %v120_v30 = vpop.f32.mrf.mxu1  ;;  %93 = vst.msk [vmem:[%s704_s1 + $0x18] sm:$0xff] %vm89_vm5, %v86_v29 }
  0xad   :  { %421 = vst.msk [vmem:[%s704_s1 + $0x38] sm:$0xff] %vm89_vm5, %v120_v30 }
  0xaf   :  { %466 = vmatmul.msk.f32.gmra.mxu2 %vm47_vm4, %v318_v21  ;;  %476 = vmatmul.msk.f32.gmra.mxu3 %vm47_vm4, %v318_v21 }
  0xb3   :  { %v254_v31 = vpop.f32.mrf.mxu0 }
  0xb4   :  { %v288_v32 = vpop.f32.mrf.mxu1  ;;  %448 = vst.msk [vmem:[%s704_s1 + $0x80] sm:$0xff] %vm89_vm5, %v254_v31 }
  0xb5   :  { %458 = vst.msk [vmem:[%s704_s1 + $0xa0] sm:$0xff] %vm89_vm5, %v288_v32 }
  0xb7   :  { %467 = vmatmul.msk.f32.gmra.mxu2 %vm47_vm4, %v320_v22  ;;  %477 = vmatmul.msk.f32.gmra.mxu3 %vm47_vm4, %v320_v22 }
  0xbb   :  { %v257_v35 = vpop.f32.mrf.mxu0 }
  0xbc   :  { %v291_v36 = vpop.f32.mrf.mxu1  ;;  %449 = vst.msk [vmem:[%s704_s1 + $0x88] sm:$0xff] %vm89_vm5, %v257_v35 }
  0xbd   :  { %459 = vst.msk [vmem:[%s704_s1 + $0xa8] sm:$0xff] %vm89_vm5, %v291_v36 }
  0xc3   :  { %v260_v39 = vpop.f32.mrf.mxu0 }
  0xc4   :  { %v294_v40 = vpop.f32.mrf.mxu1  ;;  %450 = vst.msk [vmem:[%s704_s1 + $0x90] sm:$0xff] %vm89_vm5, %v260_v39 }
  0xc5   :  { %460 = vst.msk [vmem:[%s704_s1 + $0xb0] sm:$0xff] %vm89_vm5, %v294_v40 }
  0xcb   :  { %v263_v43 = vpop.f32.mrf.mxu0 }
  0xcc   :  { %v297_v44 = vpop.f32.mrf.mxu1  ;;  %451 = vst.msk [vmem:[%s704_s1 + $0x98] sm:$0xff] %vm89_vm5, %v263_v43 }
  0xcd   :  { %461 = vst.msk [vmem:[%s704_s1 + $0xb8] sm:$0xff] %vm89_vm5, %v297_v44 }
  0xfc   :  { %v169_v33 = vpop.f32.mrf.mxu2  ;;  %v203_v34 = vpop.f32.mrf.mxu3 }
  0xfd   :  { %428 = vst.msk [vmem:[%s704_s1 + $0x40] sm:$0xff] %vm89_vm5, %v169_v33 }
  0xfe   :  { %438 = vst.msk [vmem:[%s704_s1 + $0x60] sm:$0xff] %vm89_vm5, %v203_v34 }
 0x10a   :  { %v172_v37 = vpop.f32.mrf.mxu2  ;;  %v206_v38 = vpop.f32.mrf.mxu3 }
 0x10b   :  { %429 = vst.msk [vmem:[%s704_s1 + $0x48] sm:$0xff] %vm89_vm5, %v172_v37 }
 0x10c   :  { %439 = vst.msk [vmem:[%s704_s1 + $0x68] sm:$0xff] %vm89_vm5, %v206_v38 }
 0x112   :  { %v175_v41 = vpop.f32.mrf.mxu2  ;;  %v209_v42 = vpop.f32.mrf.mxu3 }
 0x113   :  { %430 = vst.msk [vmem:[%s704_s1 + $0x50] sm:$0xff] %vm89_vm5, %v175_v41 }
 0x114   :  { %440 = vst.msk [vmem:[%s704_s1 + $0x70] sm:$0xff] %vm89_vm5, %v209_v42 }
 0x11a   :  { %v178_v45 = vpop.f32.mrf.mxu2  ;;  %v212_v46 = vpop.f32.mrf.mxu3 }
 0x11b   :  { %431 = vst.msk [vmem:[%s704_s1 + $0x58] sm:$0xff] %vm89_vm5, %v178_v45 }
 0x11c   :  { %441 = vst.msk [vmem:[%s704_s1 + $0x78] sm:$0xff] %vm89_vm5, %v212_v46 }
 0x122   :  { %v346_v47 = vpop.f32.mrf.mxu2  ;;  %v380_v48 = vpop.f32.mrf.mxu3 }
 0x123   :  { %468 = vst.msk [vmem:[%s704_s1 + $0xc0] sm:$0xff] %vm89_vm5, %v346_v47 }
 0x124   :  { %478 = vst.msk [vmem:[%s704_s1 + $0xe0] sm:$0xff] %vm89_vm5, %v380_v48 }
 0x12a   :  { %v349_v49 = vpop.f32.mrf.mxu2  ;;  %v383_v50 = vpop.f32.mrf.mxu3 }
 0x12b   :  { %469 = vst.msk [vmem:[%s704_s1 + $0xc8] sm:$0xff] %vm89_vm5, %v349_v49 }
 0x12c   :  { %479 = vst.msk [vmem:[%s704_s1 + $0xe8] sm:$0xff] %vm89_vm5, %v383_v50 }
 0x132   :  { %v352_v51 = vpop.f32.mrf.mxu2  ;;  %v386_v52 = vpop.f32.mrf.mxu3 }
 0x133   :  { %470 = vst.msk [vmem:[%s704_s1 + $0xd0] sm:$0xff] %vm89_vm5, %v352_v51 }
 0x134   :  { %480 = vst.msk [vmem:[%s704_s1 + $0xf0] sm:$0xff] %vm89_vm5, %v386_v52 }
 0x13a   :  { %v355_v53 = vpop.f32.mrf.mxu2  ;;  %v389_v54 = vpop.f32.mrf.mxu3 }
 0x13b   :  { %471 = vst.msk [vmem:[%s704_s1 + $0xd8] sm:$0xff] %vm89_vm5, %v355_v53 }
 0x13c   :  { %481 = vst.msk [vmem:[%s704_s1 + $0xf8] sm:$0xff] %vm89_vm5, %v389_v54 }
 0x13d   :  { %401 = vsyncpa [#allocation3], 1 }

</bundles_post_ra>
